<compile_context>
chip_gen: v6e
topology: v6e:2x2x1
jax: 0.10.0
libtpu: 0.0.40
codegen_flags: <defaults>
</compile_context>

<pallas_src>
import numpy as np
import jax
import jax.numpy as jnp
from jax.experimental import pallas as pl
from jax.experimental.pallas import tpu as pltpu


def _hbm_copy_kernel(src_ref, dst_ref, sem):
    # One whole-buffer HBM->HBM DMA: no VMEM staging, no vregs involved.
    cp = pltpu.make_async_copy(src_ref, dst_ref, sem)
    cp.start()
    cp.wait()


def _identity_copy_pallas(a):
    """Explicit identity copy of `a` via a single HBM->HBM async DMA."""
    nbytes = a.size * a.dtype.itemsize
    return pl.pallas_call(
        _hbm_copy_kernel,
        out_shape=jax.ShapeDtypeStruct(a.shape, a.dtype),
        # Raw HBM refs on both sides: the kernel drives the DMA itself.
        in_specs=[pl.BlockSpec(memory_space=pl.ANY)],
        out_specs=pl.BlockSpec(memory_space=pl.ANY),
        scratch_shapes=[pltpu.SemaphoreType.DMA(())],
        # Advisory hint so XLA schedules/overlaps the copy correctly.
        cost_estimate=pl.CostEstimate(
            flops=0, transcendentals=0, bytes_accessed=2 * nbytes
        ),
    )(a)


def swin_filter_block_identity(x, skip_co, *, materialize=False):
    """Pallas equivalent of SwinFilterBlockIdentity.forward(x, skip_co) -> skip_co.

    Default (materialize=False): pure pass-through, zero data movement -- exactly
    what the PyTorch module does.  materialize=True forces an explicit copy into
    a fresh buffer via a single HBM->HBM DMA.  `x` is accepted but never read.
    """
    del x  # unused by the module's forward
    if not materialize:
        return skip_co
    return _identity_copy_pallas(skip_co)


if __name__ == "__main__":
    key = jax.random.PRNGKey(0)
    kx, ks, ko = jax.random.split(key, 3)

    # Small NCHW shapes consistent with the module's usage.
    x = jax.random.normal(kx, (2, 4, 16, 16), dtype=jnp.float32)
    skip_co = jax.random.normal(ks, (2, 4, 16, 16), dtype=jnp.float32)
    ref = np.asarray(jax.device_get(skip_co))

    # Fast path: what the module actually does (no kernel, no data movement).
    out_fast = jax.block_until_ready(swin_filter_block_identity(x, skip_co))

    # Explicit copy path: single whole-buffer HBM->HBM DMA.
    out_kernel = jax.block_until_ready(
        swin_filter_block_identity(x, skip_co, materialize=True)
    )

    # Odd, non-128-divisible shape: previously fell back to an alias; the DMA
    # path has no shape constraint and really copies.
    odd = jax.random.normal(ko, (2, 3, 7, 5), dtype=jnp.bfloat16)
    odd_ref = np.asarray(jax.device_get(odd))
    out_odd = jax.block_until_ready(
        swin_filter_block_identity(x, odd, materialize=True)
    )

    assert out_fast.shape == skip_co.shape and out_fast.dtype == skip_co.dtype
    assert out_kernel.shape == skip_co.shape and out_kernel.dtype == skip_co.dtype
    assert out_odd.shape == odd.shape and out_odd.dtype == odd.dtype
    assert np.array_equal(np.asarray(jax.device_get(out_fast)), ref)
    assert np.array_equal(np.asarray(jax.device_get(out_kernel)), ref)
    assert np.array_equal(np.asarray(jax.device_get(out_odd)), odd_ref)
    print("KERNEL_OK")
</pallas_src>

<mosaic_0001>
module attributes {stable_mosaic.version = 11 : i64} {
  func.func @_hbm_copy_kernel(%arg0: memref<2x4x16x16xf32, #tpu.memory_space<any>>, %arg1: memref<2x4x16x16xf32, #tpu.memory_space<any>>, %arg2: memref<!tpu.dma_semaphore, #tpu.memory_space<semaphore_mem>>) attributes {dimension_semantics = [], scalar_prefetch = 0 : i64, scratch_operands = 1 : i64, tpu.core_type = #tpu.core_type<tc>} {
    tpu.enqueue_dma source(%arg0 : memref<2x4x16x16xf32, #tpu.memory_space<any>>) target(%arg1 : memref<2x4x16x16xf32, #tpu.memory_space<any>>) target_semaphore(%arg2 : memref<!tpu.dma_semaphore, #tpu.memory_space<semaphore_mem>>)
    tpu.wait_dma2 semaphore(%arg2 : memref<!tpu.dma_semaphore, #tpu.memory_space<semaphore_mem>>) src(%arg0 : memref<2x4x16x16xf32, #tpu.memory_space<any>>) dst(%arg1 : memref<2x4x16x16xf32, #tpu.memory_space<any>>)
    return
  }
}

</mosaic_0001>

<bundles_post_ra>
// kernel: tpu_custom_call.1
= control target key start
LH: loop header
LB: loop body
LE: loop exit
PB: predicated region body
PF: predicated region fallthrough
CT: control target
= control target key end

     0   :  { %s30_s6 = smov [#allocation2]   ;;  %s31_s7 = smov 131072   ;;  %s49_s0 = inlined_call_operand.hbm [shape: f32[2,4,16,16], index: 0, kind: input, shape index: {}]   ;;  %s50_s1 = inlined_call_operand.hbm [shape: f32[2,4,16,16], index: 1, kind: output, shape index: {}]  }
   0x1   :  { %s32_s8 = smov 0  }
   0x2   :  { %12 = dma.general %s49_s0, 2048, %s50_s1, %s30_s6, %s31_s7, [#allocation4], %s32_s8, 0  }
   0x3   :  { %28 = dma.done.wait [#allocation2], 2048 }
   0x4   :  { %29 = vsyncadd [#allocation2], 4294965248 }
   0x5   :  { %18 = vsyncmov [#allocation2] }
   0x8   :  { %s19_s13 = vpop.sfrf %18 }
   0x9   :  { %p24_p0 = scmp.ne.s32.totalorder %s19_s13, 0 }
   0xb   :  { %23 = shalt.err (%p24_p0)  }

</bundles_post_ra>
